<compile_context>
chip_gen: v7x
topology: tpu7x:2x2x1
jax: 0.10.0
libtpu: 0.0.40
codegen_flags: <defaults>
</compile_context>

<pallas_src>
import functools

import jax
import jax.numpy as jnp
from jax.experimental import pallas as pl
from jax.experimental.pallas import tpu as pltpu


def _round_up(x, m):
    return (x + m - 1) // m * m


def _largest_tile(rows8, max_rt):
    """Largest multiple of 8 that divides rows8 and is <= max_rt (>= 8)."""
    best = 8
    for rt in range(8, min(max_rt, rows8) + 1, 8):
        if rows8 % rt == 0:
            best = rt
    return best


# -----------------------------------------------------------------------------
# Kernel 1: per-class pixel counts (enet_weighing histogram).
#   labels laid out (splits, rows, 128); int32 accumulator, one dense += /step.
# -----------------------------------------------------------------------------
def _hist_kernel(labels_ref, counts_ref, *, num_classes):
    # labels_ref: (1, TR, 128) int32 ; counts_ref: (1, num_classes, 128) int32
    @pl.when(pl.program_id(1) == 0)
    def _():
        counts_ref[...] = jnp.zeros_like(counts_ref)

    y = labels_ref[0]                                            # (TR, 128)
    parts = [jnp.sum((y == c).astype(jnp.int32), axis=0, keepdims=True)
             for c in range(num_classes)]
    counts_ref[0] += jnp.concatenate(parts, axis=0)              # single dense RMW


def class_counts(labels_1d, num_classes, *, ignore_lb, rows_per_step=2048,
                 num_splits=2):
    p = labels_1d.shape[0]
    rows = pl.cdiv(p, 128)
    rows8 = _round_up(rows, 8)
    tr = min(rows_per_step, rows8)
    rows_pad = _round_up(rows, num_splits * tr)
    pad = rows_pad * 128 - p
    if pad:
        # padded pixels carry the ignore label -> never counted
        labels_1d = jnp.pad(labels_1d, (0, pad), constant_values=ignore_lb)
    lab3d = labels_1d.reshape(num_splits, rows_pad // num_splits, 128)
    steps = (rows_pad // num_splits) // tr

    out = pl.pallas_call(
        functools.partial(_hist_kernel, num_classes=num_classes),
        out_shape=jax.ShapeDtypeStruct((num_splits, num_classes, 128),
                                       jnp.int32),
        grid=(num_splits, steps),
        in_specs=[pl.BlockSpec((1, tr, 128), lambda s, i: (s, i, 0))],
        out_specs=pl.BlockSpec((1, num_classes, 128), lambda s, i: (s, 0, 0)),
        compiler_params=pltpu.CompilerParams(
            dimension_semantics=("parallel", "arbitrary")),
    )(lab3d)
    return out.sum(axis=(0, 2))                                  # (num_classes,) int32


# -----------------------------------------------------------------------------
# Kernel 2: per-pixel weighted cross-entropy, sublane-dense (rows, 128) tiles.
# -----------------------------------------------------------------------------
def _weighted_ce_kernel(w_ref, logits_ref, labels_ref, loss_ref, *,
                        num_classes, chunk):
    # w_ref:      (num_classes,) f32 in SMEM
    # logits_ref: (1, C, RT, 128)  native dtype (bf16 friendly)
    # labels_ref: (1, 1, RT, 128)  int32
    # loss_ref:   (1, 1, RT, 128)  f32  (lane-dense, unmasked stores)
    rt = logits_ref.shape[2]
    n_chunks = rt // chunk

    def body(i, carry):
        r0 = pl.multiple_of(i * chunk, chunk)
        y = labels_ref[0, 0, pl.ds(r0, chunk), :]                # (chunk, 128)

        # streaming class-max (re-loads are cheap: 3 vld slots/cycle)
        m = logits_ref[0, 0, pl.ds(r0, chunk), :].astype(jnp.float32)
        for c in range(1, num_classes):
            m = jnp.maximum(
                m, logits_ref[0, c, pl.ds(r0, chunk), :].astype(jnp.float32))

        s = jnp.zeros_like(m)
        logit_y = jnp.zeros_like(m)
        w_y = jnp.zeros_like(m)
        for c in range(num_classes):
            xc = logits_ref[0, c, pl.ds(r0, chunk), :].astype(jnp.float32)
            s = s + jnp.exp(xc - m)                              # EUP
            sel = (y == c)
            logit_y = jnp.where(sel, xc, logit_y)
            w_y = jnp.where(sel, w_ref[c], w_y)

        lse = m + jnp.log(s)
        # Labels outside [0, num_classes) (incl. ignore_lb and padding) leave
        # w_y = logit_y = 0 -> loss = 0; clamp keeps the loss non-negative so
        # the bit-pattern rank selection below stays exact.
        loss_ref[0, 0, pl.ds(r0, chunk), :] = jnp.maximum(
            w_y * (lse - logit_y), 0.0)
        return carry

    jax.lax.fori_loop(0, n_chunks, body, 0)


def weighted_ce_per_pixel(weights, logits4, labels4, *, num_classes, rt, chunk):
    n, c, rows_pad, _ = logits4.shape
    # NOTE: on v5e, if DMA turns out exposed, pipeline_mode=pl.Buffered(3) on
    # the logits BlockSpec (or a larger rt) hides the ramp; default depth here.
    return pl.pallas_call(
        functools.partial(_weighted_ce_kernel, num_classes=num_classes,
                          chunk=chunk),
        out_shape=jax.ShapeDtypeStruct((n, 1, rows_pad, 128), jnp.float32),
        grid=(n, rows_pad // rt),
        in_specs=[
            pl.BlockSpec(memory_space=pltpu.MemorySpace.SMEM),        # weights
            pl.BlockSpec((1, c, rt, 128), lambda i, j: (i, 0, j, 0)),  # logits
            pl.BlockSpec((1, 1, rt, 128), lambda i, j: (i, 0, j, 0)),  # labels
        ],
        out_specs=pl.BlockSpec((1, 1, rt, 128), lambda i, j: (i, 0, j, 0)),
        compiler_params=pltpu.CompilerParams(
            dimension_semantics=("parallel", "parallel")),
    )(weights, logits4, labels4)


# -----------------------------------------------------------------------------
# OHEM selection helpers (plain JAX; each pass is a simple masked reduction).
# -----------------------------------------------------------------------------
def _kth_largest_nonneg(x, k):
    """Exact k-th largest (1-indexed) of a non-negative f32 vector.

    Non-negative f32 values order identically to their int32 bit patterns, so
    the k-th largest is found by a 31-step MSB-first greedy search using only
    masked-count reductions (O(P) per pass) — no sort / top_k.
    """
    bits = jax.lax.bitcast_convert_type(x, jnp.int32)

    def body(i, prefix):
        cand = prefix | (jnp.int32(1) << (30 - i))
        cnt = jnp.sum((bits >= cand).astype(jnp.int32))
        return jnp.where(cnt >= k, cand, prefix)

    kth_bits = jax.lax.fori_loop(0, 31, body, jnp.int32(0))
    return jax.lax.bitcast_convert_type(kth_bits, jnp.float32)


# -----------------------------------------------------------------------------
# Top level: WeightedOhemCELoss.forward
# -----------------------------------------------------------------------------
def weighted_ohem_ce_loss(logits_nchw, labels, *, thresh, n_min, num_classes,
                          ignore_lb=255, max_row_tile=512, chunk_rows=32):
    n, c, h, w = logits_nchw.shape
    assert c == num_classes
    # ignore handling is folded into the class-select; requires ignore_lb to
    # not be a valid class id.
    assert not (0 <= ignore_lb < num_classes)
    hw = h * w
    p_total = n * hw
    assert n_min + 1 <= p_total

    # --- enet_weighing(labels, num_classes): w_c = 1 / log(1.02 + count_c/total)
    counts = class_counts(labels.reshape(-1).astype(jnp.int32), num_classes,
                          ignore_lb=ignore_lb)
    # TODO(synk): enet_weighing denominator ambiguity — normalizing by ALL
    # pixels (incl. ignore_lb ones) like the previous version; some references
    # normalize by valid pixels only.
    weights = (1.0 / jnp.log(1.02 + counts.astype(jnp.float32) /
                             jnp.float32(p_total))).astype(jnp.float32)

    # --- sublane-dense relayout: (N, C, HW) -> (N, C, R, 128), free reshape
    rows = pl.cdiv(hw, 128)
    rows8 = _round_up(rows, 8)
    itemsize = jnp.dtype(logits_nchw.dtype).itemsize
    # keep double-buffered logits blocks within default scoped-VMEM limits
    vmem_cap = max(8, ((12 << 20) // (2 * c * 128 * itemsize)) // 8 * 8)
    rt = _largest_tile(rows8, min(max_row_tile, vmem_cap))
    rows_pad = rows8                     # rt divides rows8
    hw_pad = rows_pad * 128
    chunk = _largest_tile(rt, chunk_rows)

    logits_flat = logits_nchw.reshape(n, c, hw)
    labels_flat = labels.reshape(n, hw).astype(jnp.int32)
    if hw_pad != hw:
        logits_flat = jnp.pad(logits_flat, ((0, 0), (0, 0), (0, hw_pad - hw)))
        labels_flat = jnp.pad(labels_flat, ((0, 0), (0, hw_pad - hw)),
                              constant_values=ignore_lb)
    logits4 = logits_flat.reshape(n, c, rows_pad, 128)
    labels4 = labels_flat.reshape(n, 1, rows_pad, 128)

    loss4 = weighted_ce_per_pixel(weights, logits4, labels4,
                                  num_classes=num_classes, rt=rt, chunk=chunk)
    loss = loss4.reshape(n, hw_pad)
    if hw_pad != hw:
        loss = loss[:, :hw]
    loss = loss.reshape(-1)                                      # (N*H*W,)

    # --- OHEM selection (same semantics as torch sort-based code).
    thresh_val = -jnp.log(jnp.float32(thresh))
    # gate == sorted_desc(loss)[n_min] exactly (the (n_min+1)-th largest).
    gate = _kth_largest_nonneg(loss, n_min + 1)

    # mean of top n_min values (exact even with ties at `gate`)
    gt_gate = loss > gate
    c_gt = jnp.sum(gt_gate.astype(jnp.float32))
    sum_gt = jnp.sum(jnp.where(gt_gate, loss, 0.0))
    mean_topk = (sum_gt + (jnp.float32(n_min) - c_gt) * gate) / jnp.float32(n_min)

    # mean of values above the threshold
    gt_thr = loss > thresh_val
    cnt_thr = jnp.sum(gt_thr.astype(jnp.float32))
    sum_thr = jnp.sum(jnp.where(gt_thr, loss, 0.0))
    mean_above = sum_thr / jnp.maximum(cnt_thr, 1.0)

    return jnp.where(gate > thresh_val, mean_above, mean_topk)


# -----------------------------------------------------------------------------
# Pure-JAX reference (sort-based, mirrors the torch module) for a self-check.
# -----------------------------------------------------------------------------
def _reference(logits, labels, *, thresh, n_min, num_classes, ignore_lb):
    n, c, h, w = logits.shape
    lab = labels.reshape(-1)
    counts = jnp.sum((lab[:, None] == jnp.arange(num_classes)[None, :])
                     .astype(jnp.float32), axis=0)
    weights = 1.0 / jnp.log(1.02 + counts / jnp.float32(lab.size))
    x = logits.transpose(0, 2, 3, 1).reshape(-1, c).astype(jnp.float32)
    logp = jax.nn.log_softmax(x, axis=-1)
    valid = (lab >= 0) & (lab < num_classes)
    y_safe = jnp.where(valid, lab, 0)
    nll = -jnp.take_along_axis(logp, y_safe[:, None], axis=1)[:, 0]
    loss = jnp.where(valid, weights[y_safe] * nll, 0.0)
    loss_sorted = jnp.sort(loss)[::-1]
    thresh_val = -jnp.log(jnp.float32(thresh))
    mask = loss > thresh_val
    mean_above = (jnp.sum(jnp.where(mask, loss, 0.0))
                  / jnp.maximum(jnp.sum(mask.astype(jnp.float32)), 1.0))
    mean_topk = jnp.mean(loss_sorted[:n_min])
    return jnp.where(loss_sorted[n_min] > thresh_val, mean_above, mean_topk)


if __name__ == "__main__":
    key = jax.random.PRNGKey(0)
    k_logits, k_labels = jax.random.split(key)

    N, C, H, W = 2, 4, 16, 16
    num_classes = C
    P = N * H * W
    thresh = 0.7
    n_min = P // 16          # 32

    logits = jax.random.normal(k_logits, (N, C, H, W), dtype=jnp.float32)
    labels = jax.random.randint(k_labels, (N, H, W), 0, num_classes,
                                dtype=jnp.int32)
    labels = labels.at[0, 0, :4].set(255)   # exercise ignore_index path

    loss_fn = jax.jit(functools.partial(
        weighted_ohem_ce_loss, thresh=thresh, n_min=n_min,
        num_classes=num_classes, ignore_lb=255))
    out = jax.block_until_ready(loss_fn(logits, labels))

    ref = _reference(logits, labels, thresh=thresh, n_min=n_min,
                     num_classes=num_classes, ignore_lb=255)
    assert out.shape == () and bool(jnp.isfinite(out))
    assert bool(jnp.allclose(out, ref, rtol=2e-3, atol=2e-3)), (out, ref)
    print("KERNEL_OK")
</pallas_src>

<mosaic_0001>
module attributes {stable_mosaic.version = 11 : i64} {
  func.func @_hist_kernel(%arg0: i32, %arg1: i32, %arg2: memref<1x8x128xi32, #tpu.memory_space<vmem>>, %arg3: memref<1x4x128xi32, #tpu.memory_space<vmem>>) attributes {dimension_semantics = [#tpu.dimension_semantics<parallel>, #tpu.dimension_semantics<arbitrary>], iteration_bounds = array<i64: 2, 1>, scalar_prefetch = 0 : i64, scratch_operands = 0 : i64, tpu.core_type = #tpu.core_type<tc>, window_params = [{transform_indices = @transform_0, window_bounds = array<i64: 1, 8, 128>}, {transform_indices = @transform_1, window_bounds = array<i64: 1, 4, 128>}]} {
    %c0_i32 = arith.constant 0 : i32
    %0 = arith.cmpi eq, %arg1, %c0_i32 : i32
    %1 = arith.extui %0 : i1 to i32
    %c0_i32_0 = arith.constant 0 : i32
    %2 = arith.cmpi ne, %1, %c0_i32_0 : i32
    scf.if %2 {
      %c0_i32_13 = arith.constant 0 : i32
      %32 = vector.broadcast %c0_i32_13 : i32 to vector<1x4x128xi32>
      %c0_14 = arith.constant 0 : index
      %c0_15 = arith.constant 0 : index
      %c0_16 = arith.constant 0 : index
      %33 = vector.load %arg3[%c0_14, %c0_15, %c0_16] : memref<1x4x128xi32, #tpu.memory_space<vmem>>, vector<1x4x128xi32>
      tpu.vector_store %arg3[%c0_14, %c0_15, %c0_16], %32 {strides = array<i32>} : memref<1x4x128xi32, #tpu.memory_space<vmem>>, vector<1x4x128xi32>,
    } else {
    }
    %c0 = arith.constant 0 : index
    %c0_1 = arith.constant 0 : index
    %c0_2 = arith.constant 0 : index
    %3 = vector.load %arg2[%c0, %c0_1, %c0_2] : memref<1x8x128xi32, #tpu.memory_space<vmem>>, vector<1x8x128xi32>
    %4 = vector.shape_cast %3 : vector<1x8x128xi32> to vector<8x128xi32>
    %c0_i32_3 = arith.constant 0 : i32
    %5 = vector.broadcast %c0_i32_3 : i32 to vector<8x128xi32>
    %6 = arith.cmpi eq, %4, %5 : vector<8x128xi32>
    %7 = arith.extui %6 : vector<8x128xi1> to vector<8x128xi32>
    %cst = arith.constant dense<0> : vector<128xi32>
    %8 = vector.multi_reduction <add>, %7, %cst [0] : vector<8x128xi32> to vector<128xi32>
    %9 = vector.shape_cast %8 : vector<128xi32> to vector<1x128xi32>
    %c1_i32 = arith.constant 1 : i32
    %10 = vector.broadcast %c1_i32 : i32 to vector<8x128xi32>
    %11 = arith.cmpi eq, %4, %10 : vector<8x128xi32>
    %12 = arith.extui %11 : vector<8x128xi1> to vector<8x128xi32>
    %cst_4 = arith.constant dense<0> : vector<128xi32>
    %13 = vector.multi_reduction <add>, %12, %cst_4 [0] : vector<8x128xi32> to vector<128xi32>
    %14 = vector.shape_cast %13 : vector<128xi32> to vector<1x128xi32>
    %c2_i32 = arith.constant 2 : i32
    %15 = vector.broadcast %c2_i32 : i32 to vector<8x128xi32>
    %16 = arith.cmpi eq, %4, %15 : vector<8x128xi32>
    %17 = arith.extui %16 : vector<8x128xi1> to vector<8x128xi32>
    %cst_5 = arith.constant dense<0> : vector<128xi32>
    %18 = vector.multi_reduction <add>, %17, %cst_5 [0] : vector<8x128xi32> to vector<128xi32>
    %19 = vector.shape_cast %18 : vector<128xi32> to vector<1x128xi32>
    %c3_i32 = arith.constant 3 : i32
    %20 = vector.broadcast %c3_i32 : i32 to vector<8x128xi32>
    %21 = arith.cmpi eq, %4, %20 : vector<8x128xi32>
    %22 = arith.extui %21 : vector<8x128xi1> to vector<8x128xi32>
    %cst_6 = arith.constant dense<0> : vector<128xi32>
    %23 = vector.multi_reduction <add>, %22, %cst_6 [0] : vector<8x128xi32> to vector<128xi32>
    %24 = vector.shape_cast %23 : vector<128xi32> to vector<1x128xi32>
    %c0_7 = arith.constant 0 : index
    %c0_8 = arith.constant 0 : index
    %c0_9 = arith.constant 0 : index
    %25 = vector.load %arg3[%c0_7, %c0_8, %c0_9] : memref<1x4x128xi32, #tpu.memory_space<vmem>>, vector<1x4x128xi32>
    %26 = vector.shape_cast %25 : vector<1x4x128xi32> to vector<4x128xi32>
    %27 = tpu.concatenate %9, %14, %19, %24 in 0 : vector<1x128xi32>, vector<1x128xi32>, vector<1x128xi32>, vector<1x128xi32> -> vector<4x128xi32>
    %28 = arith.addi %26, %27 : vector<4x128xi32>
    %c0_10 = arith.constant 0 : index
    %c0_11 = arith.constant 0 : index
    %c0_12 = arith.constant 0 : index
    %29 = vector.load %arg3[%c0_10, %c0_11, %c0_12] : memref<1x4x128xi32, #tpu.memory_space<vmem>>, vector<1x4x128xi32>
    %30 = vector.shape_cast %29 : vector<1x4x128xi32> to vector<4x128xi32>
    %31 = vector.shape_cast %28 : vector<4x128xi32> to vector<1x4x128xi32>
    tpu.vector_store %arg3[%c0_10, %c0_11, %c0_12], %31 {strides = array<i32>} : memref<1x4x128xi32, #tpu.memory_space<vmem>>, vector<1x4x128xi32>,
    return
  }
  func.func @transform_0(%arg0: i32, %arg1: i32) -> (i32, i32, i32) {
    %c0_i32 = arith.constant 0 : i32
    %c0_i32_0 = arith.constant 0 : i32
    return %arg0, %arg1, %c0_i32 : i32, i32, i32
  }
  func.func @transform_1(%arg0: i32, %arg1: i32) -> (i32, i32, i32) {
    %c0_i32 = arith.constant 0 : i32
    %c0_i32_0 = arith.constant 0 : i32
    %c0_i32_1 = arith.constant 0 : i32
    return %arg0, %c0_i32, %c0_i32_0 : i32, i32, i32
  }
}

module attributes {stable_mosaic.version = 11 : i64} {
  func.func @_weighted_ce_kernel(%arg0: i32, %arg1: i32, %arg2: memref<4xf32, #tpu.memory_space<smem>>, %arg3: memref<1x4x8x128xf32, #tpu.memory_space<vmem>>, %arg4: memref<1x1x8x128xi32, #tpu.memory_space<vmem>>, %arg5: memref<1x1x8x128xf32, #tpu.memory_space<vmem>>) attributes {dimension_semantics = [#tpu.dimension_semantics<parallel>, #tpu.dimension_semantics<parallel>], iteration_bounds = array<i64: 2, 1>, scalar_prefetch = 0 : i64, scratch_operands = 0 : i64, tpu.core_type = #tpu.core_type<tc>, window_params = [{transform_indices = @transform_0, window_bounds = array<i64: 4>}, {transform_indices = @transform_1, window_bounds = array<i64: 1, 4, 8, 128>}, {transform_indices = @transform_2, window_bounds = array<i64: 1, 1, 8, 128>}, {transform_indices = @transform_3, window_bounds = array<i64: 1, 1, 8, 128>}]} {
    %c0_i32 = arith.constant 0 : i32
    %c8_i32 = arith.constant 8 : i32
    %0 = arith.muli %c0_i32, %c8_i32 : i32
    %1 = tpu.assume_multiple %0, 8 : i32
    %c0 = arith.constant 0 : index
    %c0_0 = arith.constant 0 : index
    %2 = arith.index_cast %1 : i32 to index
    %c0_1 = arith.constant 0 : index
    %3 = vector.load %arg4[%c0, %c0_0, %2, %c0_1] : memref<1x1x8x128xi32, #tpu.memory_space<vmem>>, vector<1x1x8x128xi32>
    %4 = vector.shape_cast %3 : vector<1x1x8x128xi32> to vector<8x128xi32>
    %c0_2 = arith.constant 0 : index
    %c0_3 = arith.constant 0 : index
    %5 = arith.index_cast %1 : i32 to index
    %c0_4 = arith.constant 0 : index
    %6 = vector.load %arg3[%c0_2, %c0_3, %5, %c0_4] : memref<1x4x8x128xf32, #tpu.memory_space<vmem>>, vector<1x1x8x128xf32>
    %7 = vector.shape_cast %6 : vector<1x1x8x128xf32> to vector<8x128xf32>
    %c0_5 = arith.constant 0 : index
    %c1 = arith.constant 1 : index
    %8 = arith.index_cast %1 : i32 to index
    %c0_6 = arith.constant 0 : index
    %9 = vector.load %arg3[%c0_5, %c1, %8, %c0_6] : memref<1x4x8x128xf32, #tpu.memory_space<vmem>>, vector<1x1x8x128xf32>
    %10 = vector.shape_cast %9 : vector<1x1x8x128xf32> to vector<8x128xf32>
    %11 = arith.maximumf %7, %10 : vector<8x128xf32>
    %c0_7 = arith.constant 0 : index
    %c2 = arith.constant 2 : index
    %12 = arith.index_cast %1 : i32 to index
    %c0_8 = arith.constant 0 : index
    %13 = vector.load %arg3[%c0_7, %c2, %12, %c0_8] : memref<1x4x8x128xf32, #tpu.memory_space<vmem>>, vector<1x1x8x128xf32>
    %14 = vector.shape_cast %13 : vector<1x1x8x128xf32> to vector<8x128xf32>
    %15 = arith.maximumf %11, %14 : vector<8x128xf32>
    %c0_9 = arith.constant 0 : index
    %c3 = arith.constant 3 : index
    %16 = arith.index_cast %1 : i32 to index
    %c0_10 = arith.constant 0 : index
    %17 = vector.load %arg3[%c0_9, %c3, %16, %c0_10] : memref<1x4x8x128xf32, #tpu.memory_space<vmem>>, vector<1x1x8x128xf32>
    %18 = vector.shape_cast %17 : vector<1x1x8x128xf32> to vector<8x128xf32>
    %19 = arith.maximumf %15, %18 : vector<8x128xf32>
    %cst = arith.constant 0.000000e+00 : f32
    %20 = vector.broadcast %cst : f32 to vector<8x128xf32>
    %cst_11 = arith.constant 0.000000e+00 : f32
    %21 = vector.broadcast %cst_11 : f32 to vector<8x128xf32>
    %cst_12 = arith.constant 0.000000e+00 : f32
    %22 = vector.broadcast %cst_12 : f32 to vector<8x128xf32>
    %c0_13 = arith.constant 0 : index
    %c0_14 = arith.constant 0 : index
    %23 = arith.index_cast %1 : i32 to index
    %c0_15 = arith.constant 0 : index
    %24 = vector.load %arg3[%c0_13, %c0_14, %23, %c0_15] : memref<1x4x8x128xf32, #tpu.memory_space<vmem>>, vector<1x1x8x128xf32>
    %25 = vector.shape_cast %24 : vector<1x1x8x128xf32> to vector<8x128xf32>
    %26 = arith.subf %25, %19 : vector<8x128xf32>
    %27 = math.exp %26 : vector<8x128xf32>
    %28 = arith.addf %20, %27 : vector<8x128xf32>
    %c0_i32_16 = arith.constant 0 : i32
    %29 = vector.broadcast %c0_i32_16 : i32 to vector<8x128xi32>
    %30 = arith.cmpi eq, %4, %29 : vector<8x128xi32>
    %31 = arith.select %30, %25, %21 : vector<8x128xi1>, vector<8x128xf32>
    %c0_17 = arith.constant 0 : index
    %32 = memref.load %arg2[%c0_17] : memref<4xf32, #tpu.memory_space<smem>>
    %33 = vector.broadcast %32 : f32 to vector<8x128xf32>
    %34 = arith.select %30, %33, %22 : vector<8x128xi1>, vector<8x128xf32>
    %c0_18 = arith.constant 0 : index
    %c1_19 = arith.constant 1 : index
    %35 = arith.index_cast %1 : i32 to index
    %c0_20 = arith.constant 0 : index
    %36 = vector.load %arg3[%c0_18, %c1_19, %35, %c0_20] : memref<1x4x8x128xf32, #tpu.memory_space<vmem>>, vector<1x1x8x128xf32>
    %37 = vector.shape_cast %36 : vector<1x1x8x128xf32> to vector<8x128xf32>
    %38 = arith.subf %37, %19 : vector<8x128xf32>
    %39 = math.exp %38 : vector<8x128xf32>
    %40 = arith.addf %28, %39 : vector<8x128xf32>
    %c1_i32 = arith.constant 1 : i32
    %41 = vector.broadcast %c1_i32 : i32 to vector<8x128xi32>
    %42 = arith.cmpi eq, %4, %41 : vector<8x128xi32>
    %43 = arith.select %42, %37, %31 : vector<8x128xi1>, vector<8x128xf32>
    %c1_21 = arith.constant 1 : index
    %44 = memref.load %arg2[%c1_21] : memref<4xf32, #tpu.memory_space<smem>>
    %45 = vector.broadcast %44 : f32 to vector<8x128xf32>
    %46 = arith.select %42, %45, %34 : vector<8x128xi1>, vector<8x128xf32>
    %c0_22 = arith.constant 0 : index
    %c2_23 = arith.constant 2 : index
    %47 = arith.index_cast %1 : i32 to index
    %c0_24 = arith.constant 0 : index
    %48 = vector.load %arg3[%c0_22, %c2_23, %47, %c0_24] : memref<1x4x8x128xf32, #tpu.memory_space<vmem>>, vector<1x1x8x128xf32>
    %49 = vector.shape_cast %48 : vector<1x1x8x128xf32> to vector<8x128xf32>
    %50 = arith.subf %49, %19 : vector<8x128xf32>
    %51 = math.exp %50 : vector<8x128xf32>
    %52 = arith.addf %40, %51 : vector<8x128xf32>
    %c2_i32 = arith.constant 2 : i32
    %53 = vector.broadcast %c2_i32 : i32 to vector<8x128xi32>
    %54 = arith.cmpi eq, %4, %53 : vector<8x128xi32>
    %55 = arith.select %54, %49, %43 : vector<8x128xi1>, vector<8x128xf32>
    %c2_25 = arith.constant 2 : index
    %56 = memref.load %arg2[%c2_25] : memref<4xf32, #tpu.memory_space<smem>>
    %57 = vector.broadcast %56 : f32 to vector<8x128xf32>
    %58 = arith.select %54, %57, %46 : vector<8x128xi1>, vector<8x128xf32>
    %c0_26 = arith.constant 0 : index
    %c3_27 = arith.constant 3 : index
    %59 = arith.index_cast %1 : i32 to index
    %c0_28 = arith.constant 0 : index
    %60 = vector.load %arg3[%c0_26, %c3_27, %59, %c0_28] : memref<1x4x8x128xf32, #tpu.memory_space<vmem>>, vector<1x1x8x128xf32>
    %61 = vector.shape_cast %60 : vector<1x1x8x128xf32> to vector<8x128xf32>
    %62 = arith.subf %61, %19 : vector<8x128xf32>
    %63 = math.exp %62 : vector<8x128xf32>
    %64 = arith.addf %52, %63 : vector<8x128xf32>
    %c3_i32 = arith.constant 3 : i32
    %65 = vector.broadcast %c3_i32 : i32 to vector<8x128xi32>
    %66 = arith.cmpi eq, %4, %65 : vector<8x128xi32>
    %67 = arith.select %66, %61, %55 : vector<8x128xi1>, vector<8x128xf32>
    %c3_29 = arith.constant 3 : index
    %68 = memref.load %arg2[%c3_29] : memref<4xf32, #tpu.memory_space<smem>>
    %69 = vector.broadcast %68 : f32 to vector<8x128xf32>
    %70 = arith.select %66, %69, %58 : vector<8x128xi1>, vector<8x128xf32>
    %71 = math.log %64 : vector<8x128xf32>
    %72 = arith.addf %19, %71 : vector<8x128xf32>
    %73 = arith.subf %72, %67 : vector<8x128xf32>
    %74 = arith.mulf %70, %73 : vector<8x128xf32>
    %cst_30 = arith.constant 0.000000e+00 : f32
    %75 = vector.broadcast %cst_30 : f32 to vector<8x128xf32>
    %76 = arith.maximumf %74, %75 : vector<8x128xf32>
    %c0_31 = arith.constant 0 : index
    %c0_32 = arith.constant 0 : index
    %77 = arith.index_cast %1 : i32 to index
    %c0_33 = arith.constant 0 : index
    %78 = vector.load %arg5[%c0_31, %c0_32, %77, %c0_33] : memref<1x1x8x128xf32, #tpu.memory_space<vmem>>, vector<1x1x8x128xf32>
    %79 = vector.shape_cast %78 : vector<1x1x8x128xf32> to vector<8x128xf32>
    %80 = vector.shape_cast %76 : vector<8x128xf32> to vector<1x1x8x128xf32>
    tpu.vector_store %arg5[%c0_31, %c0_32, %77, %c0_33], %80 {strides = array<i32>} : memref<1x1x8x128xf32, #tpu.memory_space<vmem>>, vector<1x1x8x128xf32>,
    %c1_i32_34 = arith.constant 1 : i32
    return
  }
  func.func @transform_0(%arg0: i32, %arg1: i32) -> i32 {
    %c0_i32 = arith.constant 0 : i32
    %c0_i32_0 = arith.constant 0 : i32
    return %c0_i32 : i32
  }
  func.func @transform_1(%arg0: i32, %arg1: i32) -> (i32, i32, i32, i32) {
    %c0_i32 = arith.constant 0 : i32
    %c0_i32_0 = arith.constant 0 : i32
    %c0_i32_1 = arith.constant 0 : i32
    return %arg0, %c0_i32, %arg1, %c0_i32_0 : i32, i32, i32, i32
  }
  func.func @transform_2(%arg0: i32, %arg1: i32) -> (i32, i32, i32, i32) {
    %c0_i32 = arith.constant 0 : i32
    %c0_i32_0 = arith.constant 0 : i32
    %c0_i32_1 = arith.constant 0 : i32
    return %arg0, %c0_i32, %arg1, %c0_i32_0 : i32, i32, i32, i32
  }
  func.func @transform_3(%arg0: i32, %arg1: i32) -> (i32, i32, i32, i32) {
    %c0_i32 = arith.constant 0 : i32
    %c0_i32_0 = arith.constant 0 : i32
    %c0_i32_1 = arith.constant 0 : i32
    return %arg0, %c0_i32, %arg1, %c0_i32_0 : i32, i32, i32, i32
  }
}

</mosaic_0001>

<bundles_post_ra>
// kernel: weighted_ohem_ce_loss.2
= control target key start
LH: loop header
LB: loop body
LE: loop exit
PB: predicated region body
PF: predicated region fallthrough
CT: control target
= control target key end

     0   :  { %s315_s6 = smov 0   ;;  %s317_s7 = smov 0   ;;  %s353_s0 = inlined_call_operand.vmem [shape: s32[2,8,128], index: 0, kind: input, shape index: {}]   ;;  %s354_s1 = inlined_call_operand.vmem [shape: s32[2,4,128], index: 1, kind: output, shape index: {}]  }
   0x1   :  { %s319_s8 = smov 0  }
   0x2 LB: > { %s23_s9 = sadd.s32 1, %s298_s7  ;;  %p250_p0 = scmp.ge.s32.totalorder %s302_s8, 1  ;;  %s302_s8 = sphi %s319_s8, %s11_s8   ;;  %s298_s7 = sphi %s317_s7, %s356_s7   ;;  %s294_s6 = sphi %s315_s6, %s355_s6  }
   0x3   : > { %p25_p1 = scmp.ge.s32.totalorder %s23_s9, 2  ;;  %p103_p2 = scmp.lt.s32.totalorder %s302_s8, 3 }
   0x5   : > { %s358_s9 = smov (%p25_p1, %s23_s9), 0  ;;  %p104_p3 = pnand %p250_p0, %p103_p2 }
   0x6   : > { %p124_p4 = scmp.lt.s32.totalorder (!%p104_p3), %s294_s6, 1  ;;  %v304_v0 = vmov (!%p104_p3), 0   ;;  %vm174_vm4 = vcmask (!%p104_p3), 1040384   ;;  %vm176_vm5 = vcmask (!%p104_p3), 1041408   ;;  %vm178_vm6 = vcmask (!%p104_p3), 1042432  }
   0x7   : > { %107 = sbr.rel (%p104_p3) target bundleno = 38 (0x26), region = 24 }
   0xe   : > { %s360_s6 = smov (!%p124_p4, %s294_s6), 1 }
   0xf   : > { %s251_s10 = sshll.u32 %s360_s6, 3  ;;  %s252_s11 = sshll.u32 %s360_s6, 2 }
  0x10   : > { %s130_s14 = scalar_lea.vmem %s353_s0, %s251_s10  ;;  %s339_s17 = scalar_lea.vmem %s354_s1, %s252_s11 }
  0x11   : > { %139 = vst [vmem:[%s339_s17] sm:$0xf] %v304_v0  ;;  %v140_v1 = vld [vmem:[%s130_s14] sm:$0xff] }
  0x12   : > { %vm141_vm0 = vcmp.eq.s32.totalorder %v140_v1, 0  ;;  %vm149_vm1 = vcmp.eq.s32.totalorder %v140_v1, 1  ;;  %vm157_vm2 = vcmp.eq.s32.totalorder %v140_v1, 2  ;;  %vm165_vm3 = vcmp.eq.s32.totalorder %v140_v1, 3 }
  0x13   : > { %v142_v2 = vsel %vm141_vm0, 1, %v304_v0  ;;  %v150_v3 = vsel %vm149_vm1, 1, %v304_v0  ;;  %v158_v4 = vsel %vm157_vm2, 1, %v304_v0  ;;  %v166_v5 = vsel %vm165_vm3, 1, %v304_v0 }
  0x14   : > { %v143_v6 = vrot.slane %v142_v2, 4  ;;  %v151_v7 = vrot.slane %v150_v3, 4  ;;  %v159_v8 = vrot.slane %v158_v4, 4  ;;  %v167_v9 = vrot.slane %v166_v5, 4 }
  0x16   : > { %v144_v10 = vadd.s32 %v143_v6, %v142_v2  ;;  %v152_v11 = vadd.s32 %v151_v7, %v150_v3  ;;  %v160_v12 = vadd.s32 %v159_v8, %v158_v4  ;;  %v168_v13 = vadd.s32 %v167_v9, %v166_v5 }
  0x18   : > { %v145_v14 = vrot.slane %v144_v10, 2  ;;  %v153_v15 = vrot.slane %v152_v11, 2  ;;  %v161_v16 = vrot.slane %v160_v12, 2  ;;  %v169_v17 = vrot.slane %v168_v13, 2  ;;  %v173_v30 = vld [vmem:[%s339_s17] sm:$0xf] }
  0x1a   : > { %v146_v18 = vadd.s32 %v145_v14, %v144_v10  ;;  %v154_v19 = vadd.s32 %v153_v15, %v152_v11  ;;  %v162_v20 = vadd.s32 %v161_v16, %v160_v12  ;;  %v170_v21 = vadd.s32 %v169_v17, %v168_v13 }
  0x1c   : > { %v147_v22 = vrot.slane %v146_v18, 1  ;;  %v155_v23 = vrot.slane %v154_v19, 1  ;;  %v163_v24 = vrot.slane %v162_v20, 1  ;;  %v171_v25 = vrot.slane %v170_v21, 1 }
  0x1e   : > { %v148_v26 = vadd.s32 %v147_v22, %v146_v18  ;;  %v156_v27 = vadd.s32 %v155_v23, %v154_v19  ;;  %v164_v28 = vadd.s32 %v163_v24, %v162_v20  ;;  %v172_v29 = vadd.s32 %v171_v25, %v170_v21 }
  0x20   : > { %v175_v31 = vsel %vm174_vm4, %v148_v26, %v156_v27 }
  0x21   : > { %v177_v32 = vsel %vm176_vm5, %v175_v31, %v164_v28 }
  0x22   : > { %v179_v33 = vsel %vm178_vm6, %v177_v32, %v172_v29 }
  0x23   : > { %v180_v34 = vadd.s32 %v179_v33, %v173_v30 }
  0x25   : > { %181 = vst [vmem:[%s339_s17] sm:$0xf] %v180_v34 }
  0x26 PF: > { %s11_s8 = sadd.s32 1, %s302_s8   ;;  %s355_s6 = smov %s298_s7 }
  0x27   : > { %p8_p5 = scmp.ge.s32.totalorder %s11_s8, 4   ;;  %s356_s7 = smov %s358_s9 }
  0x29   :  { %10 = sbr.rel (!%p8_p5) target bundleno = 2 (0x2), region = 58 }

// kernel: weighted_ohem_ce_loss.3
= control target key start
LH: loop header
LB: loop body
LE: loop exit
PB: predicated region body
PF: predicated region fallthrough
CT: control target
= control target key end

     0   :  { %8 = vsyncpa [#allocation3], 0  ;;  %s536_s12 = smov 0   ;;  %s538_s13 = smov 0   ;;  %s606_s0 = inlined_call_operand.vmem [shape: f32[4], index: 0, kind: input, shape index: {}]   ;;  %s607_s1 = inlined_call_operand.vmem [shape: f32[2,4,8,128], index: 1, kind: input, shape index: {}]   ;;  %s608_s2 = inlined_call_operand.vmem [shape: s32[2,1,8,128], index: 2, kind: input, shape index: {}]   ;;  %s609_s3 = inlined_call_operand.vmem [shape: f32[2,1,8,128], index: 3, kind: output, shape index: {}]  }
   0x1   :  { %s540_s14 = smov 0  }
   0x2 LB: > { %s407_s15 = sadd.s32 4294967295, %s513_s14   ;;  %s26_s16 = sadd.s32 1, %s509_s13  ;;  %s513_s14 = sphi %s540_s14, %s14_s14   ;;  %s509_s13 = sphi %s538_s13, %s613_s13   ;;  %s505_s12 = sphi %s536_s12, %s612_s12  }
   0x3   : > { %p28_p0 = scmp.ge.s32.totalorder %s26_s16, 2  ;;  %p409_p1 = scmp.ge.s32.totalorder %s513_s14, 1 }
   0x4   : > { %p136_p2 = scmp.lt.s32.totalorder %s513_s14, 3  ;;  %p561_p4 = scmp.eq.s32.totalorder %s407_s15, 0 }
   0x5   : > { %s615_s16 = smov (%p28_p0, %s26_s16), 0  ;;  %s149_s21 = sshll.u32 %s606_s0, 4  ;;  %s150_s21 = int_to_ptr.vmem [resolvable:$true] %s149_s21 }
   0x6   : > { %p557_p3 = pnand %p409_p1, %p136_p2  ;;  %s472_s22 = scalar_lea.vmem %s150_s21, 16 }
   0x7   : > { %p473_p7 = scmp.ne.s32.totalorder %s150_s21, %s472_s22  ;;  %p480_p11 = scmp.lt.s32.totalorder %s150_s21, %s150_s21 }
   0x8   : > { %p431_p5 = pneg %p557_p3  ;;  %p481_p12 = scmp.lt.s32.totalorder %s472_s22, %s472_s22 }
   0xa   : > { %p432_p6 = pnand %p561_p4, %p431_p5  ;;  %p482_p13 = por %p481_p12, %p480_p11 }
   0xc   : > { %p474_p8 = pneg %p432_p6 }
   0xe   : > { %p475_p9 = pnand %p474_p8, %p473_p7 }
  0x10   : > { %p476_p10 = pneg %p475_p9 }
  0x12   : > { %p483_p0 = pnand %p482_p13, %p476_p10 }
  0x14   : > { %486 = shalt.err (!%p483_p0)
}
  0x15   : > { %s515_s23 = smov [#allocation2]   ;;  %183 = sbr.rel (%p557_p3) target bundleno = 87 (0x57), region = 32 }
  0x16   : > { %434 = dma.vmem_to_smem (!%p432_p6), %s150_s21, 16, %s515_s23, [#allocation3]  }
  0x1c   : > { %500 = dma.done.wait (%p561_p4), [#allocation3], 16  }
  0x1d   : > { %502 = vsyncadd (%p561_p4), [#allocation3], 4294967280 }
  0x1e   : > { %189 = sfence }
  0x1f   : > { %p220_p1 = scmp.lt.s32.totalorder %s505_s12, 1  ;;  %s262_s5 = sld [smem:[#allocation2]] }
  0x20   : > { %s421_s6 = sld [smem:[#allocation2 + $0x1]]  ;;  %s422_s7 = sld [smem:[#allocation2 + $0x2]] }
  0x21   : > { %s617_s12 = smov (!%p220_p1, %s505_s12), 1  ;;  %s423_s8 = sld [smem:[#allocation2 + $0x3]] }
  0x22   : > { %s426_s24 = sshll.u32 %s617_s12, 5  ;;  %s416_s28 = sshll.u32 %s617_s12, 3 }
  0x23   : > { %s227_s27 = scalar_lea.vmem %s607_s1, %s426_s24  ;;  %s234_s4 = scalar_lea.vmem %s608_s2, %s416_s28 }
  0x24   : > { %v243_v0 = vld [vmem:[%s227_s27] sm:$0xff]  ;;  %v418_v1 = vld [vmem:[%s227_s27 + $0x8] sm:$0xff]  ;;  %v419_v3 = vld [vmem:[%s227_s27 + $0x10] sm:$0xff]  ;;  %s241_s11 = scalar_lea.vmem %s609_s3, %s416_s28 }
  0x25   : > { %v247_v2 = vmax.f32 %v243_v0, %v418_v1  ;;  %v420_v4 = vld [vmem:[%s227_s27 + $0x18] sm:$0xff]  ;;  %v242_v21 = vld [vmem:[%s234_s4] sm:$0xff]  ;;  %v263_v23 = vstv %s262_s5 }
  0x26   : > { %vm260_vm0 = vcmp.eq.s32.totalorder %v242_v21, 0  ;;  %vm269_vm1 = vcmp.eq.s32.totalorder %v242_v21, 1  ;;  %v272_v26 = vstv %s421_s6  ;;  %vm278_vm2 = vcmp.eq.s32.totalorder %v242_v21, 2 }
  0x27   : > { %v251_v5 = vmax.f32 %v247_v2, %v419_v3  ;;  %v261_v24 = vsel %vm260_vm0, %v243_v0, 0.0  ;;  %v264_v25 = vsel %vm260_vm0, %v263_v23, 0.0  ;;  %v281_v29 = vstv %s422_s7 }
  0x28   : > { %v270_v27 = vsel %vm269_vm1, %v418_v1, %v261_v24  ;;  %v273_v28 = vsel %vm269_vm1, %v272_v26, %v264_v25  ;;  %vm287_vm3 = vcmp.eq.s32.totalorder %v242_v21, 3  ;;  %v290_v33 = vstv %s423_s8 }
  0x29   : > { %v255_v6 = vmax.f32 %v251_v5, %v420_v4  ;;  %v279_v30 = vsel %vm278_vm2, %v419_v3, %v270_v27  ;;  %v282_v32 = vsel %vm278_vm2, %v281_v29, %v273_v28 }
  0x2a   : > { %v288_v35 = vsel %vm287_vm3, %v420_v4, %v279_v30  ;;  %v291_v37 = vsel %vm287_vm3, %v290_v33, %v282_v32 }
  0x2b   : > { %v256_v7 = vsub.f32 %v243_v0, %v255_v6  ;;  %v265_v8 = vsub.f32 %v418_v1, %v255_v6  ;;  %v274_v9 = vsub.f32 %v419_v3, %v255_v6  ;;  %v283_v10 = vsub.f32 %v420_v4, %v255_v6 }
  0x2d   : > { %v257_v11 = vmul.f32 1.442695, %v256_v7  ;;  %v266_v12 = vmul.f32 1.442695, %v265_v8  ;;  %v275_v13 = vmul.f32 1.442695, %v274_v9 }
  0x2e   : > { %v284_v14 = vmul.f32 1.442695, %v283_v10 }
  0x2f   : > { %462 = vpow2.f32 %v257_v11 }
  0x30   : > { %464 = vpow2.f32 %v266_v12 }
  0x31   : > { %466 = vpow2.f32 %v275_v13 }
  0x32   : > { %468 = vpow2.f32 %v284_v14 }
  0x39   : > { %v463_v15 = vpop.eup %462 }
  0x3a   : > { %v465_v16 = vpop.eup %464 }
  0x3b   : > { %v467_v17 = vpop.eup %466  ;;  %v268_v18 = vadd.f32 %v465_v16, %v463_v15 }
  0x3c   : > { %v469_v19 = vpop.eup %468 }
  0x3d   : > { %v277_v20 = vadd.f32 %v467_v17, %v268_v18 }
  0x3f   : > { %v286_v22 = vadd.f32 %v469_v19, %v277_v20 }
  0x41   : > { %470 = vlog2.f32 %v286_v22 }
  0x4b   : > { %v471_v31 = vpop.eup %470 }
  0x4c   : > { %v293_v34 = vmul.f32 0.6931472, %v471_v31 }
  0x4e   : > { %v294_v36 = vadd.f32 %v293_v34, %v255_v6 }
  0x50   : > { %v295_v38 = vsub.f32 %v294_v36, %v288_v35 }
  0x52   : > { %v296_v39 = vmul.f32 %v295_v38, %v291_v37 }
  0x54   : > { %v297_v40 = vmax.f32 %v296_v39, 0.0 }
  0x56   : > { %298 = vst [vmem:[%s241_s11] sm:$0xff] %v297_v40 }
  0x57 PF: > { %s14_s14 = sadd.s32 1, %s513_s14   ;;  %s612_s12 = smov %s509_s13 }
  0x58   : > { %p11_p2 = scmp.ge.s32.totalorder %s14_s14, 4   ;;  %s613_s13 = smov %s615_s16 }
  0x5a   :  { %13 = sbr.rel (!%p11_p2) target bundleno = 2 (0x2), region = 73 }
  0x61   :  { %324 = vsyncpa [#allocation3], 1 }
  0x62   :  { %326 = vsyncpa [#allocation3 + $0x1], 1 }

</bundles_post_ra>
